<compile_context>
chip_gen: v7x
topology: tpu7x:2x2x1
jax: 0.10.0
libtpu: 0.0.40
codegen_flags: <defaults>
</compile_context>

<pallas_src>
import jax
import jax.numpy as jnp
from jax.experimental import pallas as pl
from jax.experimental.pallas import tpu as pltpu


def conv1x1_hardsig_kernel(w_ref, b_ref, x_ref, o_ref):
    # w_ref: (Cin, Cout, 1) f32 VMEM, weights pre-scaled by 1/6
    # b_ref: (Cout, 1)      f32 VMEM, bias pre-folded as (bias + 3) / 6
    # x_ref: (1, Cin, T)    f32 VMEM, pixels lane-dense on the last axis
    # o_ref: (1, Cout, T)
    cin = x_ref.shape[1]
    x = x_ref[0]                                    # (Cin, T)
    acc = w_ref[0] * x[0:1, :]                      # (Cout,1)*(1,T) -> (Cout,T)
    for ci in range(1, cin):                        # Cin=3: fully unrolled
        acc = acc + w_ref[ci] * x[ci:ci + 1, :]
    # Folded hardsigmoid: clip(conv/6 + (b+3)/6, 0, 1) == clip(conv + b + 3, 0, 6)/6
    o_ref[0] = jnp.clip(acc + b_ref[...], 0.0, 1.0).astype(o_ref.dtype)


def _choose_tile(p, n_batch):
    candidates = (8192, 4096, 2048, 1024, 512, 256, 128)
    tile = None
    # Prefer a lane-dense tile that divides p exactly (no masked last block).
    for t in candidates:
        if p % t == 0:
            tile = t
            break
    if tile is None:
        # Largest lane-dense tile not exceeding the 128-rounded-up extent;
        # the last grid block is masked by Pallas (cdiv grid).
        p128 = pl.cdiv(p, 128) * 128
        for t in candidates:
            if t <= p128:
                tile = t
                break
        if tile is None:
            tile = 128
    # v7x has 2 TensorCores: keep at least 2 blocks across the parallel axes.
    while n_batch * pl.cdiv(p, tile) < 2 and tile > 128:
        tile //= 2
    return tile


def model_forward(x, conv_w, conv_b):
    """x: (N, Cin, H, W) f32; conv_w: (Cout, Cin, 1, 1); conv_b: (Cout,)."""
    N, Cin, H, W = x.shape
    Cout = conv_w.shape[0]
    Hp, Wp = H + 2, W + 2
    Pp = Hp * Wp

    # Fold the hardsigmoid into the affine map: y = clip(x @ (w/6) + (b+3)/6, 0, 1).
    w_s = conv_w.reshape(Cout, Cin).astype(jnp.float32) * (1.0 / 6.0)
    w_k = jnp.transpose(w_s).reshape(Cin, Cout, 1)            # (Cin, Cout, 1)
    b_k = ((conv_b.astype(jnp.float32) + 3.0) * (1.0 / 6.0)).reshape(Cout, 1)

    # kernel=1, padding=1: pre-pad the 3-channel input once; the 1-pixel border
    # then computes clip(b', 0, 1) == hardsigmoid(bias) inside the kernel.
    xp = jnp.pad(x, ((0, 0), (0, 0), (1, 1), (1, 1)))
    x3 = xp.reshape(N, Cin, Pp)                                # pure reshape

    tile = _choose_tile(Pp, N)
    n_tiles = pl.cdiv(Pp, tile)

    out = pl.pallas_call(
        conv1x1_hardsig_kernel,
        out_shape=jax.ShapeDtypeStruct((N, Cout, Pp), x.dtype),
        grid=(N, n_tiles),
        in_specs=[
            pl.BlockSpec((Cin, Cout, 1), lambda n, t: (0, 0, 0)),   # weights (tiny, VMEM)
            pl.BlockSpec((Cout, 1), lambda n, t: (0, 0)),           # bias (tiny, VMEM)
            pl.BlockSpec((1, Cin, tile), lambda n, t: (n, 0, t)),   # activations
        ],
        out_specs=pl.BlockSpec((1, Cout, tile), lambda n, t: (n, 0, t)),
        compiler_params=pltpu.CompilerParams(
            dimension_semantics=("parallel", "parallel")),
    )(w_k, b_k, x3)

    return out.reshape(N, Cout, Hp, Wp)


if __name__ == "__main__":
    key = jax.random.PRNGKey(0)
    k_x, k_w, k_b = jax.random.split(key, 3)

    # Small shapes consistent with the module (Cin=3, Cout=8 fixed by Conv2d(3, 8, 1)).
    N, Cin, H, W = 2, 3, 16, 16
    Cout = 8

    x = jax.random.normal(k_x, (N, Cin, H, W), dtype=jnp.float32)
    bound = 1.0 / jnp.sqrt(jnp.float32(Cin * 1 * 1))
    conv_w = jax.random.uniform(k_w, (Cout, Cin, 1, 1), jnp.float32, -bound, bound)
    conv_b = jax.random.uniform(k_b, (Cout,), jnp.float32, -bound, bound)

    out = model_forward(x, conv_w, conv_b)
    jax.block_until_ready(out)

    # Pure-JAX reference of the original module: conv(k=1, pad=1) -> (v+3).clamp(0,6)/6.
    xp = jnp.pad(x, ((0, 0), (0, 0), (1, 1), (1, 1)))
    ref = jnp.einsum("oc,nchw->nohw", conv_w.reshape(Cout, Cin), xp)
    ref = ref + conv_b.reshape(1, Cout, 1, 1)
    ref = jnp.clip(ref + 3.0, 0.0, 6.0) / 6.0

    assert out.shape == (N, Cout, H + 2, W + 2), out.shape
    assert bool(jnp.all(jnp.isfinite(out)))
    assert bool(jnp.all(out >= 0.0)) and bool(jnp.all(out <= 1.0))
    assert bool(jnp.allclose(out, ref, atol=1e-5, rtol=1e-5)), float(
        jnp.max(jnp.abs(out - ref)))
    print("KERNEL_OK")
</pallas_src>

<mosaic_0001>
module attributes {stable_mosaic.version = 11 : i64} {
  func.func @conv1x1_hardsig_kernel(%arg0: i32, %arg1: i32, %arg2: memref<3x8x1xf32, #tpu.memory_space<vmem>>, %arg3: memref<8x1xf32, #tpu.memory_space<vmem>>, %arg4: memref<1x3x256xf32, #tpu.memory_space<vmem>>, %arg5: memref<1x8x256xf32, #tpu.memory_space<vmem>>) attributes {dimension_semantics = [#tpu.dimension_semantics<parallel>, #tpu.dimension_semantics<parallel>], iteration_bounds = array<i64: 2, 2>, scalar_prefetch = 0 : i64, scratch_operands = 0 : i64, tpu.core_type = #tpu.core_type<tc>, window_params = [{pipeline_mode = #tpu.pipeline_mode<synchronous>, transform_indices = @transform_0, window_bounds = array<i64: 3, 8, 1>}, {pipeline_mode = #tpu.pipeline_mode<synchronous>, transform_indices = @transform_1, window_bounds = array<i64: 8, 1>}, {transform_indices = @transform_2, window_bounds = array<i64: 1, 3, 256>}, {transform_indices = @transform_3, window_bounds = array<i64: 1, 8, 256>}]} {
    %c0 = arith.constant 0 : index
    %c0_0 = arith.constant 0 : index
    %c0_1 = arith.constant 0 : index
    %0 = vector.load %arg4[%c0, %c0_0, %c0_1] : memref<1x3x256xf32, #tpu.memory_space<vmem>>, vector<1x3x256xf32>
    %1 = vector.shape_cast %0 : vector<1x3x256xf32> to vector<3x256xf32>
    %c0_2 = arith.constant 0 : index
    %c0_3 = arith.constant 0 : index
    %c0_4 = arith.constant 0 : index
    %2 = vector.load %arg2[%c0_2, %c0_3, %c0_4] : memref<3x8x1xf32, #tpu.memory_space<vmem>>, vector<1x8x1xf32>
    %3 = vector.shape_cast %2 : vector<1x8x1xf32> to vector<8x1xf32>
    %4 = vector.extract_strided_slice %1 {offsets = [0, 0], sizes = [1, 256], strides = [1, 1]} : vector<3x256xf32> to vector<1x256xf32>
    %5 = vector.broadcast %3 : vector<8x1xf32> to vector<8x256xf32>
    %6 = vector.broadcast %4 : vector<1x256xf32> to vector<8x256xf32>
    %7 = arith.mulf %5, %6 : vector<8x256xf32>
    %c1 = arith.constant 1 : index
    %c0_5 = arith.constant 0 : index
    %c0_6 = arith.constant 0 : index
    %8 = vector.load %arg2[%c1, %c0_5, %c0_6] : memref<3x8x1xf32, #tpu.memory_space<vmem>>, vector<1x8x1xf32>
    %9 = vector.shape_cast %8 : vector<1x8x1xf32> to vector<8x1xf32>
    %10 = vector.extract_strided_slice %1 {offsets = [1, 0], sizes = [1, 256], strides = [1, 1]} : vector<3x256xf32> to vector<1x256xf32>
    %11 = vector.broadcast %9 : vector<8x1xf32> to vector<8x256xf32>
    %12 = vector.broadcast %10 : vector<1x256xf32> to vector<8x256xf32>
    %13 = arith.mulf %11, %12 : vector<8x256xf32>
    %14 = arith.addf %7, %13 : vector<8x256xf32>
    %c2 = arith.constant 2 : index
    %c0_7 = arith.constant 0 : index
    %c0_8 = arith.constant 0 : index
    %15 = vector.load %arg2[%c2, %c0_7, %c0_8] : memref<3x8x1xf32, #tpu.memory_space<vmem>>, vector<1x8x1xf32>
    %16 = vector.shape_cast %15 : vector<1x8x1xf32> to vector<8x1xf32>
    %17 = vector.extract_strided_slice %1 {offsets = [2, 0], sizes = [1, 256], strides = [1, 1]} : vector<3x256xf32> to vector<1x256xf32>
    %18 = vector.broadcast %16 : vector<8x1xf32> to vector<8x256xf32>
    %19 = vector.broadcast %17 : vector<1x256xf32> to vector<8x256xf32>
    %20 = arith.mulf %18, %19 : vector<8x256xf32>
    %21 = arith.addf %14, %20 : vector<8x256xf32>
    %c0_9 = arith.constant 0 : index
    %c0_10 = arith.constant 0 : index
    %22 = vector.load %arg3[%c0_9, %c0_10] : memref<8x1xf32, #tpu.memory_space<vmem>>, vector<8x1xf32>
    %23 = vector.broadcast %22 : vector<8x1xf32> to vector<8x256xf32>
    %24 = arith.addf %21, %23 : vector<8x256xf32>
    %cst = arith.constant 0.000000e+00 : f32
    %cst_11 = arith.constant 1.000000e+00 : f32
    %25 = vector.broadcast %cst : f32 to vector<8x256xf32>
    %26 = arith.maximumf %25, %24 : vector<8x256xf32>
    %27 = vector.broadcast %cst_11 : f32 to vector<8x256xf32>
    %28 = arith.minimumf %27, %26 : vector<8x256xf32>
    %c0_12 = arith.constant 0 : index
    %c0_13 = arith.constant 0 : index
    %c0_14 = arith.constant 0 : index
    %29 = vector.load %arg5[%c0_12, %c0_13, %c0_14] : memref<1x8x256xf32, #tpu.memory_space<vmem>>, vector<1x8x256xf32>
    %30 = vector.shape_cast %29 : vector<1x8x256xf32> to vector<8x256xf32>
    %31 = vector.shape_cast %28 : vector<8x256xf32> to vector<1x8x256xf32>
    tpu.vector_store %arg5[%c0_12, %c0_13, %c0_14], %31 {strides = array<i32>} : memref<1x8x256xf32, #tpu.memory_space<vmem>>, vector<1x8x256xf32>,
    return
  }
  func.func @transform_0(%arg0: i32, %arg1: i32) -> (i32, i32, i32) {
    %c0_i32 = arith.constant 0 : i32
    %c0_i32_0 = arith.constant 0 : i32
    %c0_i32_1 = arith.constant 0 : i32
    %c0_i32_2 = arith.constant 0 : i32
    return %c0_i32, %c0_i32_0, %c0_i32_1 : i32, i32, i32
  }
  func.func @transform_1(%arg0: i32, %arg1: i32) -> (i32, i32) {
    %c0_i32 = arith.constant 0 : i32
    %c0_i32_0 = arith.constant 0 : i32
    %c0_i32_1 = arith.constant 0 : i32
    return %c0_i32, %c0_i32_0 : i32, i32
  }
  func.func @transform_2(%arg0: i32, %arg1: i32) -> (i32, i32, i32) {
    %c0_i32 = arith.constant 0 : i32
    %c0_i32_0 = arith.constant 0 : i32
    return %arg0, %c0_i32, %arg1 : i32, i32, i32
  }
  func.func @transform_3(%arg0: i32, %arg1: i32) -> (i32, i32, i32) {
    %c0_i32 = arith.constant 0 : i32
    %c0_i32_0 = arith.constant 0 : i32
    return %arg0, %c0_i32, %arg1 : i32, i32, i32
  }
}

</mosaic_0001>

<bundles_post_ra>
// kernel: tpu_custom_call.1
= control target key start
LH: loop header
LB: loop body
LE: loop exit
PB: predicated region body
PF: predicated region fallthrough
CT: control target
= control target key end

     0   :  { %8 = vsyncpa [#allocation3], 0  ;;  %s801_s0 = inlined_call_operand.vmem [shape: f32[3,8,1], index: 0, kind: input, shape index: {}]   ;;  %s802_s1 = inlined_call_operand.vmem [shape: f32[8,1], index: 1, kind: input, shape index: {}]   ;;  %s803_s2 = inlined_call_operand.vmem [shape: f32[2,3,324], index: 2, kind: input, shape index: {}]   ;;  %s804_s3 = inlined_call_operand.hbm [shape: f32[2,8,324], index: 3, kind: output, shape index: {}]  }
   0x1   :  { %10 = vsyncpa [#allocation3 + $0x1], 0  ;;  %s638_s12 = smov 0   ;;  %s640_s13 = smov 0  }
   0x2   :  { %s642_s14 = smov 0   ;;  %s644_s15 = smov 0  }
   0x3   :  { %s646_s16 = smov 0   ;;  %s648_s17 = smov 0  }
   0x4   :  { %s650_s18 = smov 0   ;;  %s652_s19 = smov 0  }
   0x5 LB: > { %s426_s20 = sadd.s32 4294967295, %s614_s19   ;;  %s427_s21 = sadd.s32 4294967294, %s614_s19   ;;  %s614_s19 = sphi %s652_s19, %s16_s19   ;;  %s610_s18 = sphi %s650_s18, %s813_s18   ;;  %s606_s17 = sphi %s648_s17, %s812_s17   ;;  %s602_s16 = sphi %s646_s16, %s811_s16   ;;  %s598_s15 = sphi %s644_s15, %s810_s15   ;;  %s594_s14 = sphi %s642_s14, %s809_s14   ;;  %s590_s13 = sphi %s640_s13, %s808_s13   ;;  %s586_s12 = sphi %s638_s12, %s807_s12  }
   0x6   : > { %s25_s22 = sadd.s32 1, %s606_s17  ;;  %s28_s23 = sadd.s32 1, %s610_s18 }
   0x7   : > { %p26_p0 = scmp.ge.s32.totalorder %s25_s22, 2  ;;  %p117_p1 = scmp.ne.s32.totalorder %s594_s14, %s590_s13 }
   0x8   : > { %p118_p2 = scmp.eq.s32.totalorder %s426_s20, 3  ;;  %p123_p5 = scmp.ne.s32.totalorder %s590_s13, %s586_s12 }
   0x9   : > { %s815_s22 = smov (%p26_p0, %s25_s22), 0  ;;  %s817_s23 = smov (!%p26_p0, %s28_s23), %s610_s18 }
   0xa   : > { %s103_s24 = ssub.s32 %s606_s17, %s815_s22  ;;  %p689_p3 = por %p118_p2, %p117_p1 }
   0xb   : > { %p30_p4 = scmp.ge.s32.totalorder %s817_s23, 2  ;;  %p124_p6 = scmp.eq.s32.totalorder %s427_s21, 3 }
   0xc   : > { %p430_p7 = scmp.ge.s32.totalorder %s614_s19, 1  ;;  %p169_p9 = scmp.lt.s32.totalorder %s614_s19, 5 }
   0xd   : > { %s819_s23 = smov (%p30_p4, %s817_s23), 0  ;;  %p698_p8 = por %p124_p6, %p123_p5 }
   0xe   : > { %s102_s27 = ssub.s32 %s610_s18, %s819_s23  ;;  %s107_s28 = sadd.s32 1, %s594_s14 }
   0xf   : > { %s104_s29 = sor.u32 %s103_s24, %s102_s27  ;;  %p170_p10 = pnand %p430_p7, %p169_p9 }
  0x10   : > { %p105_p11 = scmp.eq.s32.totalorder %s104_s29, 0  ;;  %v225_v0 = vld [vmem:[%s801_s0] sm:$0xff] (!%p170_p10)  ;;  %v435_v1 = vld [vmem:[%s801_s0 + $0x10] sm:$0xff] (!%p170_p10)  ;;  %v616_v2 = vmov (!%p170_p10), 0   ;;  %v434_v3 = vld [vmem:[%s801_s0 + $0x8] sm:$0xff] (!%p170_p10)  ;;  %s198_s20 = sand.u32 (!%p170_p10), 1, %s590_s13   ;;  %v232_v5 = vlaneseq (!%p170_p10) }
  0x11   : > { %173 = sbr.rel (%p170_p10) target bundleno = 192 (0xc0), region = 32  ;;  %518 = vset.pattern.permute.xlu0 (!%p170_p10), %v616_v2  ;;  %519 = vset.pattern.permute.xlu1 (!%p170_p10), %v616_v2  ;;  %v310_v4 = vld [vmem:[%s802_s1] sm:$0xff] (!%p170_p10)  ;;  %s723_s21 = sshll.u32 (!%p170_p10), %s598_s15, 1 }
  0x12   : > { %s707_s30 = scalar_select %p105_p11, %s594_s14, %s107_s28  }
  0x13   : > { %228 = vperm.xlu0 (!%p170_p10), %518, %v225_v0   ;;  %285 = vperm.xlu1 (!%p170_p10), %519, %v435_v1   ;;  %p206_p12 = scmp.lt.s32.totalorder (!%p170_p10), %s602_s16, 1  ;;  %p208_p13 = scmp.lt.s32.totalorder (!%p170_p10), %s723_s21, 2  ;;  %v233_v6 = vshrl.u32 (!%p170_p10), %v232_v5, 7 }
  0x14   : > { %s431_s15 = sshll.u32 (!%p170_p10), %s198_s20, 4  ;;  %s736_s9 = scalar_lea.sflag (!%p170_p10), [#allocation3], %s198_s20 }
  0x15   : > { %v234_v7 = vsub.s32 (!%p170_p10), 0, %v233_v6  ;;  %v238_v8 = vsub.s32 (!%p170_p10), 4, %v233_v6  ;;  %v290_v10 = vsub.s32 (!%p170_p10), 2, %v233_v6  ;;  %v294_v11 = vsub.s32 (!%p170_p10), 6, %v233_v6  ;;  %s200_s8 = scalar_lea.vmem (!%p170_p10), [#allocation2], %s431_s15 }
  0x16   : > { %v261_v12 = vsub.s32 (!%p170_p10), 1, %v233_v6  ;;  %v265_v13 = vsub.s32 (!%p170_p10), 5, %v233_v6 }
  0x17   : > { %256 = vperm.xlu0 (!%p170_p10), %518, %v434_v3   ;;  %313 = vperm.xlu1 (!%p170_p10), %519, %v310_v4  }
  0x18   : > { %s207_s24 = scalar_select %p206_p12, %s602_s16, 1 }
  0x19   : > { %s209_s27 = scalar_select %p208_p13, %s723_s21, 2 }
  0x1a   : > { %s445_s28 = smul.u32 3, %s207_s24  ;;  %s333_s10 = ssub.s32 (%p689_p3), 3, %s723_s21 }
  0x1b   : > { %p334_p0 = scmp.lt.s32.totalorder (%p689_p3), %s333_s10, 2 }
  0x1c   : > { %s211_s29 = sadd.s32 %s445_s28, %s209_s27 }
  0x1d   : > { %s433_s4 = sshll.u32 %s211_s29, 2 }
  0x1e   : > { %s213_s7 = scalar_lea.vmem %s803_s2, %s433_s4 }
  0x1f   : > { %v224_v9 = vld [vmem:[%s213_s7] sm:$0x77] }
  0x20   : > { %v235_v14 = vrot.slane %v224_v9, %v234_v7  ;;  %v239_v15 = vrot.slane %v224_v9, %v238_v8  ;;  %v291_v16 = vrot.slane %v224_v9, %v290_v10  ;;  %v295_v17 = vrot.slane %v224_v9, %v294_v11 }
  0x21   : > { %v262_v18 = vrot.slane %v224_v9, %v261_v12  ;;  %v266_v19 = vrot.slane %v224_v9, %v265_v13 }
  0x22   : > { %v245_v21 = vrot.slane %v235_v14, %v234_v7  ;;  %v249_v22 = vrot.slane %v239_v15, %v234_v7  ;;  %v301_v23 = vrot.slane %v291_v16, %v290_v10  ;;  %v305_v24 = vrot.slane %v295_v17, %v290_v10 }
  0x23   : > { %v272_v25 = vrot.slane %v262_v18, %v261_v12  ;;  %v276_v26 = vrot.slane %v266_v19, %v261_v12 }
  0x92   : > { %v229_v20 = vpop.permute.xlu0 %228  ;;  %v286_v29 = vpop.permute.xlu1 %285 }
  0x93   : > { %v250_v27 = vmul.f32 %v245_v21, %v229_v20  ;;  %v251_v28 = vmul.f32 %v249_v22, %v229_v20  ;;  %v306_v31 = vmul.f32 %v301_v23, %v286_v29  ;;  %v307_v32 = vmul.f32 %v305_v24, %v286_v29 }
  0x96   : > { %v257_v30 = vpop.permute.xlu0 %256  ;;  %v314_v39 = vpop.permute.xlu1 %313 }
  0x97   : > { %v277_v33 = vmul.f32 %v272_v25, %v257_v30  ;;  %v278_v34 = vmul.f32 %v276_v26, %v257_v30 }
  0x99   : > { %v279_v35 = vadd.f32 %v277_v33, %v250_v27  ;;  %v280_v36 = vadd.f32 %v278_v34, %v251_v28 }
  0x9b   : > { %v308_v37 = vadd.f32 %v306_v31, %v279_v35  ;;  %v309_v38 = vadd.f32 %v307_v32, %v280_v36 }
  0x9d   : > { %v316_v40 = vadd.f32 %v314_v39, %v308_v37  ;;  %v317_v41 = vadd.f32 %v314_v39, %v309_v38  ;;  %331 = sbr.rel (!%p689_p3) target bundleno = 192 (0xc0), region = 36 }
  0x9f   : > { %v318_v42 = vmax.f32 %v316_v40, 0.0  ;;  %v319_v43 = vmax.f32 %v317_v41, 0.0 }
  0xa1   : > { %v320_v44 = vmin.f32 %v318_v42, 1.0  ;;  %v321_v45 = vmin.f32 %v319_v43, 1.0 }
  0xa3   : > { %322 = vst [vmem:[%s200_s8] sm:$0xff] %v320_v44  ;;  %323 = vst [vmem:[%s200_s8 + $0x8] sm:$0xff] %v321_v45 }
  0xa4   : > { %s821_s10 = smov (!%p334_p0, %s333_s10), 2 }
  0xa5   : > { %s741_s11 = sshll.u32 %s821_s10, 7 }
  0xa6   : > { %s338_s24 = ssub.s32 256, %s741_s11 }
  0xa7   : > { %339 = vsyncadd %s736_s9, %s338_s24  ;;  %s446_s20 = smul.u32 3, %s602_s16  ;;  %p439_p1 = scmp.ne.s32.totalorder %s741_s11, 0 }
  0xa8   : > { %s347_s27 = sshll.u32 %s200_s8, 4  ;;  %s617_s7 = smov [#allocation2]   ;;  %s748_s27 = int_to_ptr.vmem [resolvable:$true] %s347_s27 }
  0xa9   : > { %s342_s25 = sadd.s32 %s446_s20, %s723_s21  ;;  %s520_s6 = scalar_lea.vmem %s748_s27, %s741_s11 }
  0xaa   : > { %s440_s28 = sshll.u32 %s342_s25, 7  ;;  %p521_p2 = scmp.ne.s32.totalorder %s748_s27, %s520_s6 }
  0xab   : > { %s344_s5 = scalar_lea.hbm %s804_s3, %s440_s28  ;;  %s524_s16 = sshll.u32 %s617_s7, 4  ;;  %s525_s16 = int_to_ptr.vmem [resolvable:$false] %s524_s16 }
  0xac   : > { %p522_p3 = pnand %p521_p2, %p439_p1  ;;  %s526_s15 = scalar_lea.vmem %s525_s16, 512 }
  0xad   : > { %p527_p5 = scmp.lt.s32.totalorder %s748_s27, %s525_s16  ;;  %p528_p6 = scmp.lt.s32.totalorder %s526_s15, %s520_s6 }
  0xae   : > { %p523_p4 = pneg %p522_p3 }
  0xaf   : > { %p529_p7 = por %p528_p6, %p527_p5 }
  0xb1   : > { %p530_p9 = pnand %p529_p7, %p523_p4 }
  0xb3   : > { %533 = shalt.err (!%p530_p9)
}
  0xb4   : > { %s534_s21 = scalar_lea.hbm %s344_s5, %s741_s11  ;;  %s538_s24 = scalar_lea.hbm %s804_s3, 768 }
  0xb5   : > { %p535_p10 = scmp.ne.s32.totalorder %s344_s5, %s534_s21  ;;  %p539_p13 = scmp.lt.u32.totalorder %s344_s5, %s804_s3 }
  0xb6   : > { %p540_p0 = scmp.lt.u32.totalorder %s538_s24, %s534_s21  ;;  %p542_p3 = scmp.lt.u32.totalorder %s534_s21, %s344_s5 }
  0xb7   : > { %p536_p11 = pnand %p535_p10, %p439_p1 }
  0xb8   : > { %p541_p2 = por %p540_p0, %p539_p13 }
  0xb9   : > { %p537_p12 = pneg %p536_p11 }
  0xba   : > { %p543_p4 = por %p542_p3, %p541_p2 }
  0xbc   : > { %p544_p5 = pnand %p543_p4, %p537_p12 }
  0xbe   : > { %547 = shalt.err (!%p544_p5)
}
  0xbf   : > { %350 = dma.vmem_to_hbm [thread:$0]  (%p439_p1), %s748_s27, %s741_s11, %s344_s5, %s736_s9  }
  0xc0 PF: > { %p452_p6 = scmp.ge.s32.totalorder %s614_s19, 2  ;;  %s359_s28 = sand.u32 1, %s586_s12  }
  0xc1   : > { %s360_s29 = scalar_lea.sflag [#allocation3], %s359_s28 }
  0xc2   : > { %p449_p7 = pnand %p452_p6, %p698_p8 }
  0xc4   : > { %581 = dma.done.wait (!%p449_p7), %s360_s29, 256  }
  0xc5   : > { %583 = vsyncadd (!%p449_p7), %s360_s29, 4294967040  ;;  %s16_s19 = sadd.s32 1, %s614_s19   ;;  %s807_s12 = smov %s590_s13 }
  0xc6   : > { %p13_p9 = scmp.ge.s32.totalorder %s16_s19, 6   ;;  %s808_s13 = smov %s594_s14 }
  0xc7   : > { %s809_s14 = smov %s707_s30  ;;  %s810_s15 = smov %s606_s17 }
  0xc8   : > { %s811_s16 = smov %s610_s18  ;;  %s812_s17 = smov %s815_s22 }
  0xc9   : > { %s813_s18 = smov %s819_s23  ;;  %15 = sbr.rel (!%p13_p9) target bundleno = 5 (0x5), region = 69 }
  0xd0   :  { %365 = vsyncpa [#allocation3], 1 }
  0xd1   :  { %367 = vsyncpa [#allocation3 + $0x1], 1 }

</bundles_post_ra>
